<compile_context>
chip_gen: v7x
topology: tpu7x:2x2x1
jax: 0.10.0
libtpu: 0.0.40
codegen_flags: <defaults>
</compile_context>

<pallas_src>
import functools

import jax
import jax.numpy as jnp
import numpy as np
from jax.experimental import pallas as pl
from jax.experimental.pallas import tpu as pltpu

# ----- LogQuantConfig defaults (from the PyTorch module) -----
MOMENTUM = 0.1
THRESHOLD = 1e-5
EPS = 1e-8
BITS = 8
MAX_VALUE = float(2 ** BITS - 1)  # 255 (upper clamp provably inactive: q <= 27)

LANE = 512              # lane-dense slab width (multiple of 128)
BLOCK_ROWS_MAX = 1024   # <= (1024, 512) f32 per grid step (~2 MiB in, ~0.5 MiB out)
ROW_ALIGN = 32          # keep split blocks sublane-aligned for int8 outputs
SMALL_ROWS = 256        # below this, one full-array block (no split needed)
TARGET_TILES = 4        # >= 2 TensorCores (v7x) x 2 for DMA/compute overlap


def _cdiv(a, b):
    return -(-a // b)


def _round_up(a, b):
    return _cdiv(a, b) * b


def _plan_blocks(rows):
    """Pick (block_rows, ntiles) for a (rows, LANE) slab.

    Small slabs run as a single full-array block (no alignment constraints).
    Large slabs aim for >= TARGET_TILES grid steps with ROW_ALIGN-aligned
    blocks capped at BLOCK_ROWS_MAX; an exact divisor is preferred, otherwise
    the ragged last tile is masked in-kernel."""
    if rows <= SMALL_ROWS:
        return rows, 1
    block_rows = min(BLOCK_ROWS_MAX, _round_up(_cdiv(rows, TARGET_TILES), ROW_ALIGN))
    for cand in range(block_rows, max(ROW_ALIGN - 1, block_rows - 8 * ROW_ALIGN),
                      -ROW_ALIGN):
        if rows % cand == 0:
            block_rows = cand
            break
    return block_rows, _cdiv(rows, block_rows)


# ---------------------------------------------------------------------------
# Pallas kernel
# ---------------------------------------------------------------------------
def _quantize_kernel(inv_scale_ref, x_ref, c1_ref, c2_ref, emax_ref, *,
                     block_rows, ntiles, last_valid_rows, sub):
    """Log-quantize one (block_rows, LANE) tile.

    Packed signed-magnitude outputs (sign(0) -> +1):
      c1 = sign(x)   * (q1 + 1)   with q1 = max(round(-log2(|x|/a + eps)), 0)
      c2 = sign(err) * (q2 + 1)   with q2 over the residual err
      emax: per-tile partial max of |err| (VPU-only; cross-lane reduce outside)
    """
    x = x_ref[...]
    inv_a = inv_scale_ref[0]            # 1/scale precomputed on host

    # primary log code (upper clamp dropped: EPS=1e-8 bounds q1 <= 27, so the
    # +-(q1+1) code always fits int8; inputs assumed finite).
    mag = jnp.abs(x) * inv_a + EPS
    q1f = jnp.maximum(jnp.round(-jnp.log2(mag)), 0.0)
    c1f = jnp.where(x < 0.0, -(q1f + 1.0), q1f + 1.0)
    # two-step cast: the i32->i8 step is the (required) lane pack.
    c1_ref[...] = c1f.astype(jnp.int32).astype(jnp.int8)

    # residual error; q1f >= 0 so exp2(-q1f) never overflows.
    err = x * inv_a + EPS - jnp.exp2(-q1f)
    aerr = jnp.abs(err)

    # second-level code (always computed; the consumer gates it with the
    # device-side |err| > threshold flag -> numerically identical to torch's
    # data-dependent branch, with no host sync).
    nerr = aerr * inv_a + EPS
    q2f = jnp.maximum(jnp.round(-jnp.log2(nerr)), 0.0)
    c2f = jnp.where(err < 0.0, -(q2f + 1.0), q2f + 1.0)
    c2_ref[...] = c2f.astype(jnp.int32).astype(jnp.int8)

    # per-tile |err| partial max.  If the grid has a ragged last tile the
    # out-of-bounds rows hold stale VMEM data -> mask them (trace-time
    # specialized; zero cost when the grid divides evenly).
    if last_valid_rows is not None:
        lim = jnp.where(pl.program_id(0) == ntiles - 1, last_valid_rows, block_rows)
        row_ids = jax.lax.broadcasted_iota(jnp.int32, aerr.shape, 0)
        aerr = jnp.where(row_ids < lim, aerr, 0.0)
    if sub == 8:
        emax_ref[0] = jnp.max(aerr.reshape(-1, 8, LANE), axis=0)
    else:
        emax_ref[0] = jnp.max(aerr, axis=0, keepdims=True)


def quantize_pallas(x2d, inv_scale):
    """Run the packed log-quantize kernel over a (rows, LANE) f32 slab."""
    rows = x2d.shape[0]
    block_rows, ntiles = _plan_blocks(rows)
    last_valid = rows - (ntiles - 1) * block_rows
    sub = 8 if block_rows % 8 == 0 else 1
    kernel = functools.partial(
        _quantize_kernel, block_rows=block_rows, ntiles=ntiles,
        last_valid_rows=(last_valid if last_valid != block_rows else None), sub=sub)
    tile = pl.BlockSpec((block_rows, LANE), lambda i: (i, 0))
    return pl.pallas_call(
        kernel,
        out_shape=(
            jax.ShapeDtypeStruct((rows, LANE), jnp.int8),            # c1 = s    * (q1+1)
            jax.ShapeDtypeStruct((rows, LANE), jnp.int8),            # c2 = serr * (q2+1)
            jax.ShapeDtypeStruct((ntiles, sub, LANE), jnp.float32),  # max|err| partials
        ),
        grid=(ntiles,),
        in_specs=[
            pl.BlockSpec(memory_space=pltpu.SMEM),   # inv_scale, shape (1,)
            tile,                                    # x slab
        ],
        out_specs=(tile, tile, pl.BlockSpec((1, sub, LANE), lambda i: (i, 0, 0))),
        compiler_params=pltpu.CompilerParams(dimension_semantics=("parallel",)),
    )(inv_scale, x2d)


# ---------------------------------------------------------------------------
# Glue: slab building / module state / packed LogQuantizedTensor container
# ---------------------------------------------------------------------------
def _to_slab(x):
    """Flatten x row-major into a lane-dense (rows, LANE) f32 slab.

    When numel % LANE == 0 this is a pure reshape (no HBM copy).  Otherwise the
    flat tail is zero-padded up to one LANE row; padded zeros give
    |err| ~ 2.5e-9 << THRESHOLD, so they never trip the has_err flag."""
    flat = x.reshape(-1)
    if flat.dtype != jnp.float32:
        flat = flat.astype(jnp.float32)
    n = int(flat.shape[0])
    rem = n % LANE
    if rem:
        # TODO(synk): for very large LANE-unaligned tensors, mask the ragged
        # lane tail in-kernel instead of paying this pad copy.
        flat = jnp.pad(flat, (0, LANE - rem))
    return flat.reshape(-1, LANE), n


class LogQuantizedTensorJAX:
    """JAX analogue of LogQuantizedTensor with a packed storage format.

    The Pallas kernel emits signed-magnitude int8 codes kept in the lane-dense
    (rows, LANE) slab layout:
        c1 = sign(x)   * (q1 + 1)        c2 = sign(err) * (q2 + 1)
    so only two int8 streams hit HBM.  The torch-compatible views q1/s/q2/s_err
    are decoded (and un-padded) lazily; dequantize() decodes directly.
    `has_err` is the device-side any(|err| > threshold) flag that gates the
    second-level term (no host synchronization)."""

    def __init__(self, c1, a, c2, *, n, shape, has_err=None, r=None):
        self.c1 = c1
        self.c2 = c2
        self.a = a
        self.r = r
        self.has_err = has_err
        self._n = n
        self._shape = tuple(shape)

    # -- lazy un-pad of a packed slab back to the logical activation shape --
    def _unpad(self, slab):
        return slab.reshape(-1)[: self._n].reshape(self._shape)

    # -- torch-compatible decoded views --
    @property
    def q1(self):
        return (jnp.abs(self._unpad(self.c1)) - 1).astype(jnp.int8)

    @property
    def s(self):
        return jnp.where(self._unpad(self.c1) < 0, -1, 1).astype(jnp.int8)

    @property
    def q2(self):
        return (jnp.abs(self._unpad(self.c2)) - 1).astype(jnp.int8)

    @property
    def s_err(self):
        return jnp.where(self._unpad(self.c2) < 0, -1, 1).astype(jnp.int8)

    @property
    def shape(self):
        return self._shape

    def dequantize(self):
        if self.r is not None:
            return self.r
        ndim = len(self._shape)
        a = self.a.reshape(self.a.shape + (1,) * (ndim - self.a.ndim))
        c1 = self._unpad(self.c1).astype(jnp.float32)
        # sign(c) is never 0 (|c| >= 1); exp2(1 - |c|) == exp2(-q)
        prim = jnp.sign(c1) * a * jnp.maximum(jnp.exp2(1.0 - jnp.abs(c1)), EPS)
        if self.c2 is not None:
            c2 = self._unpad(self.c2).astype(jnp.float32)
            second = jnp.sign(c2) * a * jnp.maximum(jnp.exp2(1.0 - jnp.abs(c2)), EPS)
            if self.has_err is not None:
                second = jnp.where(self.has_err, second, 0.0)
            return prim + second
        return prim


class LogQuantize:
    """JAX/Pallas port of the activation-quantization path of the PyTorch
    LogQuantizedOperator / LogQuantizedConv2dBatchNorm2dReLU (forward only)."""
    # TODO(synk): the parent module's Conv2d/BatchNorm2d/ReLU data path and the
    # per-channel weight quantization are standard dense XLA ops (MXU matmul /
    # tiny per-channel reductions) and are intentionally left to XLA; the
    # Pallas kernel covers the custom elementwise log-quantization hot path.

    def __init__(self):
        self.momentum = MOMENTUM
        self.threshold = THRESHOLD
        self.eps = EPS
        self.running_max_abs = jnp.full((1,), EPS, dtype=jnp.float32)
        self.num_batches_tracked = 0
        self.activation_quantization = False
        self.training = True

    def update_max_abs_stats(self, x):
        if not self.training:
            return
        # Plain XLA abs+max on the raw tensor: already HBM-roofline, and keeps
        # the stats-only path free of any slab/pad plumbing (review item).
        max_abs = jnp.maximum(jnp.max(jnp.abs(x)).astype(jnp.float32),
                              jnp.float32(self.eps))
        if self.num_batches_tracked == 0:
            self.running_max_abs = max_abs.reshape(1)
        else:
            self.running_max_abs = (max_abs * self.momentum
                                    + self.running_max_abs * (1.0 - self.momentum))
        self.num_batches_tracked += 1

    def quantize_log_output(self, x):
        assert self.num_batches_tracked >= 1
        x2d, n = _to_slab(x)
        inv_scale = (1.0 / self.running_max_abs).astype(jnp.float32)
        c1, c2, err_part = quantize_pallas(x2d, inv_scale)
        has_err = jnp.max(err_part) > jnp.float32(self.threshold)  # stays on device
        return LogQuantizedTensorJAX(c1, self.running_max_abs, c2,
                                     n=n, shape=x.shape, has_err=has_err)

    def forward(self, x):
        self.update_max_abs_stats(x)
        if self.activation_quantization:
            return self.quantize_log_output(x)
        return x

    __call__ = forward


# ---------------------------------------------------------------------------
# Pure-JAX reference (mirrors the torch code exactly, divides + wrap and all)
# ---------------------------------------------------------------------------
def reference_quantize(x, scale):
    s = jnp.sign(x)
    s = jnp.where(s == 0, jnp.ones_like(s), s)
    normalized = jnp.abs(x) / scale + EPS
    q1i = jnp.clip(jnp.round(-jnp.log2(normalized)), 0.0, MAX_VALUE).astype(jnp.int32)
    q1 = (((q1i + 128) % 256) - 128).astype(jnp.int8)
    err = x / scale + EPS - jnp.exp2(-q1.astype(jnp.float32))
    s_err = jnp.sign(err)
    s_err = jnp.where(s_err == 0, jnp.ones_like(s_err), s_err)
    nerr = jnp.abs(err) / scale + EPS
    q2i = jnp.clip(jnp.round(-jnp.log2(nerr)), 0.0, MAX_VALUE).astype(jnp.int32)
    q2 = (((q2i + 128) % 256) - 128).astype(jnp.int8)
    any_flag = bool(jnp.any(jnp.abs(err) > THRESHOLD))
    return q1, s, q2, s_err, any_flag


def _check_against_reference(x, mod, out):
    q1_ref, s_ref, q2_ref, serr_ref, flag_ref = reference_quantize(
        x, mod.running_max_abs)
    q1 = np.asarray(out.q1)
    s = np.asarray(out.s)
    assert q1.dtype == np.int8 and q1.shape == x.shape
    assert np.asarray(out.q2).dtype == np.int8
    # sign depends only on x -> exact
    np.testing.assert_array_equal(s, np.asarray(s_ref).astype(np.int8))
    # small tolerance: transcendental rounding + (x * 1/a) vs (x / a) paths
    assert np.mean(q1 == np.asarray(q1_ref)) > 0.999
    assert np.mean(np.asarray(out.q2) == np.asarray(q2_ref)) > 0.99
    assert np.mean(np.asarray(out.s_err)
                   == np.asarray(serr_ref).astype(np.int8)) > 0.99
    # flag read back on host only here, in the test
    assert bool(jax.device_get(out.has_err)) == flag_ref


if __name__ == "__main__":
    # --- small NCHW activation (single-block path): batch=2, ch=4, 16x16 ---
    x_small = jax.random.normal(jax.random.PRNGKey(0), (2, 4, 16, 16),
                                dtype=jnp.float32)
    mod = LogQuantize()
    mod.activation_quantization = True   # exercise the quantization hot path
    mod.training = True

    out = mod(x_small)
    jax.block_until_ready(out.c1)
    jax.block_until_ready(out.c2)

    np.testing.assert_allclose(np.asarray(mod.running_max_abs)[0],
                               float(jnp.max(jnp.abs(x_small))), rtol=1e-6)
    _check_against_reference(x_small, mod, out)

    deq = jax.block_until_ready(out.dequantize())
    assert deq.shape == x_small.shape
    assert bool(jnp.all(jnp.isfinite(deq)))

    # --- larger activation: exercises the multi-tile grid (4 parallel steps,
    #     zero-copy slab since numel % 512 == 0) ---
    x_big = jax.random.normal(jax.random.PRNGKey(1), (2, 8, 128, 128),
                              dtype=jnp.float32)
    mod2 = LogQuantize()
    mod2.activation_quantization = True
    out2 = mod2(x_big)
    jax.block_until_ready(out2.c1)
    _check_against_reference(x_big, mod2, out2)

    print("KERNEL_OK")
</pallas_src>

<mosaic_0001>
module attributes {stable_mosaic.version = 11 : i64} {
  func.func @_quantize_kernel(%arg0: i32, %arg1: memref<1xf32, #tpu.memory_space<smem>>, %arg2: memref<4x512xf32, #tpu.memory_space<vmem>>, %arg3: memref<4x512xi8, #tpu.memory_space<vmem>>, %arg4: memref<4x512xi8, #tpu.memory_space<vmem>>, %arg5: memref<1x1x512xf32, #tpu.memory_space<vmem>>) attributes {dimension_semantics = [#tpu.dimension_semantics<parallel>], iteration_bounds = array<i64: 1>, scalar_prefetch = 0 : i64, scratch_operands = 0 : i64, tpu.core_type = #tpu.core_type<tc>, window_params = [{transform_indices = @transform_0, window_bounds = array<i64: 1>}, {transform_indices = @transform_1, window_bounds = array<i64: 4, 512>}, {transform_indices = @transform_2, window_bounds = array<i64: 4, 512>}, {transform_indices = @transform_3, window_bounds = array<i64: 4, 512>}, {transform_indices = @transform_4, window_bounds = array<i64: 1, 1, 512>}]} {
    %c0 = arith.constant 0 : index
    %c0_0 = arith.constant 0 : index
    %0 = vector.load %arg2[%c0, %c0_0] : memref<4x512xf32, #tpu.memory_space<vmem>>, vector<4x512xf32>
    %c0_1 = arith.constant 0 : index
    %1 = memref.load %arg1[%c0_1] : memref<1xf32, #tpu.memory_space<smem>>
    %2 = math.absf %0 : vector<4x512xf32>
    %3 = vector.broadcast %1 : f32 to vector<4x512xf32>
    %4 = arith.mulf %2, %3 : vector<4x512xf32>
    %cst = arith.constant 9.99999993E-9 : f32
    %5 = vector.broadcast %cst : f32 to vector<4x512xf32>
    %6 = arith.addf %4, %5 : vector<4x512xf32>
    %7 = math.log %6 : vector<4x512xf32>
    %cst_2 = arith.constant 2.000000e+00 : f32
    %8 = math.log %cst_2 : f32
    %9 = vector.broadcast %8 : f32 to vector<4x512xf32>
    %10 = arith.divf %7, %9 : vector<4x512xf32>
    %cst_3 = arith.constant 0.000000e+00 : f32
    %11 = vector.broadcast %cst_3 : f32 to vector<4x512xf32>
    %12 = arith.subf %11, %10 : vector<4x512xf32>
    %13 = math.roundeven %12 : vector<4x512xf32>
    %cst_4 = arith.constant 0.000000e+00 : f32
    %14 = vector.broadcast %cst_4 : f32 to vector<4x512xf32>
    %15 = arith.maximumf %13, %14 : vector<4x512xf32>
    %cst_5 = arith.constant 0.000000e+00 : f32
    %16 = vector.broadcast %cst_5 : f32 to vector<4x512xf32>
    %17 = arith.cmpf olt, %0, %16 : vector<4x512xf32>
    %cst_6 = arith.constant 1.000000e+00 : f32
    %18 = vector.broadcast %cst_6 : f32 to vector<4x512xf32>
    %19 = arith.addf %15, %18 : vector<4x512xf32>
    %cst_7 = arith.constant 0.000000e+00 : f32
    %20 = vector.broadcast %cst_7 : f32 to vector<4x512xf32>
    %21 = arith.subf %20, %19 : vector<4x512xf32>
    %cst_8 = arith.constant 1.000000e+00 : f32
    %22 = vector.broadcast %cst_8 : f32 to vector<4x512xf32>
    %23 = arith.addf %15, %22 : vector<4x512xf32>
    %24 = arith.select %17, %21, %23 : vector<4x512xi1>, vector<4x512xf32>
    %25 = arith.fptosi %24 : vector<4x512xf32> to vector<4x512xi32>
    %26 = arith.trunci %25 : vector<4x512xi32> to vector<4x512xi8>
    %c0_9 = arith.constant 0 : index
    %c0_10 = arith.constant 0 : index
    %27 = vector.load %arg3[%c0_9, %c0_10] : memref<4x512xi8, #tpu.memory_space<vmem>>, vector<4x512xi8>
    tpu.vector_store %arg3[%c0_9, %c0_10], %26 {strides = array<i32>} : memref<4x512xi8, #tpu.memory_space<vmem>>, vector<4x512xi8>,
    %28 = vector.broadcast %1 : f32 to vector<4x512xf32>
    %29 = arith.mulf %0, %28 : vector<4x512xf32>
    %cst_11 = arith.constant 9.99999993E-9 : f32
    %30 = vector.broadcast %cst_11 : f32 to vector<4x512xf32>
    %31 = arith.addf %29, %30 : vector<4x512xf32>
    %cst_12 = arith.constant 0.000000e+00 : f32
    %32 = vector.broadcast %cst_12 : f32 to vector<4x512xf32>
    %33 = arith.subf %32, %15 : vector<4x512xf32>
    %34 = math.exp2 %33 : vector<4x512xf32>
    %35 = arith.subf %31, %34 : vector<4x512xf32>
    %36 = math.absf %35 : vector<4x512xf32>
    %37 = vector.broadcast %1 : f32 to vector<4x512xf32>
    %38 = arith.mulf %36, %37 : vector<4x512xf32>
    %cst_13 = arith.constant 9.99999993E-9 : f32
    %39 = vector.broadcast %cst_13 : f32 to vector<4x512xf32>
    %40 = arith.addf %38, %39 : vector<4x512xf32>
    %41 = math.log %40 : vector<4x512xf32>
    %cst_14 = arith.constant 2.000000e+00 : f32
    %42 = math.log %cst_14 : f32
    %43 = vector.broadcast %42 : f32 to vector<4x512xf32>
    %44 = arith.divf %41, %43 : vector<4x512xf32>
    %cst_15 = arith.constant 0.000000e+00 : f32
    %45 = vector.broadcast %cst_15 : f32 to vector<4x512xf32>
    %46 = arith.subf %45, %44 : vector<4x512xf32>
    %47 = math.roundeven %46 : vector<4x512xf32>
    %cst_16 = arith.constant 0.000000e+00 : f32
    %48 = vector.broadcast %cst_16 : f32 to vector<4x512xf32>
    %49 = arith.maximumf %47, %48 : vector<4x512xf32>
    %cst_17 = arith.constant 0.000000e+00 : f32
    %50 = vector.broadcast %cst_17 : f32 to vector<4x512xf32>
    %51 = arith.cmpf olt, %35, %50 : vector<4x512xf32>
    %cst_18 = arith.constant 1.000000e+00 : f32
    %52 = vector.broadcast %cst_18 : f32 to vector<4x512xf32>
    %53 = arith.addf %49, %52 : vector<4x512xf32>
    %cst_19 = arith.constant 0.000000e+00 : f32
    %54 = vector.broadcast %cst_19 : f32 to vector<4x512xf32>
    %55 = arith.subf %54, %53 : vector<4x512xf32>
    %cst_20 = arith.constant 1.000000e+00 : f32
    %56 = vector.broadcast %cst_20 : f32 to vector<4x512xf32>
    %57 = arith.addf %49, %56 : vector<4x512xf32>
    %58 = arith.select %51, %55, %57 : vector<4x512xi1>, vector<4x512xf32>
    %59 = arith.fptosi %58 : vector<4x512xf32> to vector<4x512xi32>
    %60 = arith.trunci %59 : vector<4x512xi32> to vector<4x512xi8>
    %c0_21 = arith.constant 0 : index
    %c0_22 = arith.constant 0 : index
    %61 = vector.load %arg4[%c0_21, %c0_22] : memref<4x512xi8, #tpu.memory_space<vmem>>, vector<4x512xi8>
    tpu.vector_store %arg4[%c0_21, %c0_22], %60 {strides = array<i32>} : memref<4x512xi8, #tpu.memory_space<vmem>>, vector<4x512xi8>,
    %cst_23 = arith.constant dense<0xFF800000> : vector<512xf32>
    %62 = vector.multi_reduction <maximumf>, %36, %cst_23 [0] : vector<4x512xf32> to vector<512xf32>
    %63 = vector.shape_cast %62 : vector<512xf32> to vector<1x512xf32>
    %c0_24 = arith.constant 0 : index
    %c0_25 = arith.constant 0 : index
    %c0_26 = arith.constant 0 : index
    %64 = vector.load %arg5[%c0_24, %c0_25, %c0_26] : memref<1x1x512xf32, #tpu.memory_space<vmem>>, vector<1x1x512xf32>
    %65 = vector.shape_cast %64 : vector<1x1x512xf32> to vector<1x512xf32>
    %66 = vector.shape_cast %63 : vector<1x512xf32> to vector<1x1x512xf32>
    tpu.vector_store %arg5[%c0_24, %c0_25, %c0_26], %66 {strides = array<i32>} : memref<1x1x512xf32, #tpu.memory_space<vmem>>, vector<1x1x512xf32>,
    return
  }
  func.func @transform_0(%arg0: i32) -> i32 {
    %c0_i32 = arith.constant 0 : i32
    %c0_i32_0 = arith.constant 0 : i32
    return %c0_i32 : i32
  }
  func.func @transform_1(%arg0: i32) -> (i32, i32) {
    %c0_i32 = arith.constant 0 : i32
    %c0_i32_0 = arith.constant 0 : i32
    return %arg0, %c0_i32 : i32, i32
  }
  func.func @transform_2(%arg0: i32) -> (i32, i32) {
    %c0_i32 = arith.constant 0 : i32
    %c0_i32_0 = arith.constant 0 : i32
    return %arg0, %c0_i32 : i32, i32
  }
  func.func @transform_3(%arg0: i32) -> (i32, i32) {
    %c0_i32 = arith.constant 0 : i32
    %c0_i32_0 = arith.constant 0 : i32
    return %arg0, %c0_i32 : i32, i32
  }
  func.func @transform_4(%arg0: i32) -> (i32, i32, i32) {
    %c0_i32 = arith.constant 0 : i32
    %c0_i32_0 = arith.constant 0 : i32
    %c0_i32_1 = arith.constant 0 : i32
    return %arg0, %c0_i32, %c0_i32_0 : i32, i32, i32
  }
}

</mosaic_0001>

<bundles_post_ra>
// kernel: tpu_custom_call.1
= control target key start
LH: loop header
LB: loop body
LE: loop exit
PB: predicated region body
PF: predicated region fallthrough
CT: control target
= control target key end

     0   :  { %11 = vsyncpa [#allocation4], 0  ;;  %s522_s0 = inlined_call_operand.<no memory space> [shape: f32[1], index: 0, kind: input, shape index: {}]   ;;  %s523_s1 = inlined_call_operand.hbm [shape: f32[4,512], index: 1, kind: input, shape index: {}]   ;;  %s524_s2 = inlined_call_operand.hbm [shape: s8[4,512], index: 2, kind: output, shape index: {0}]   ;;  %s525_s3 = inlined_call_operand.hbm [shape: s8[4,512], index: 3, kind: output, shape index: {1}]   ;;  %s526_s4 = inlined_call_operand.hbm [shape: f32[1,1,512], index: 4, kind: output, shape index: {2}]  }
   0x1   :  { %12 = vsyncpa [#allocation5], 0 }
   0x2   :  { %13 = vsyncpa [#allocation8], 0  ;;  %s410_s15 = smov [#allocation3]   ;;  %s316_s19 = scalar_lea.hbm %s523_s1, 256 }
   0x3   :  { %s22_s16 = sshll.u32 %s410_s15, 4  ;;  %p317_p0 = scmp.ne.s32.totalorder %s523_s1, %s316_s19  ;;  %s23_s16 = int_to_ptr.vmem [resolvable:$true] %s22_s16 }
   0x4   :  { %p320_p1 = scmp.lt.u32.totalorder %s316_s19, %s523_s1 }
   0x6   :  { %p322_p2 = pnand %p320_p1, %p317_p0 }
   0x8   :  { %325 = shalt.err (!%p322_p2)
}
   0x9   :  { %s326_s24 = scalar_lea.vmem %s23_s16, 256  ;;  %p331_p4 = scmp.lt.s32.totalorder %s23_s16, %s23_s16 }
   0xa   :  { %p327_p3 = scmp.ne.s32.totalorder %s23_s16, %s326_s24  ;;  %p332_p5 = scmp.lt.s32.totalorder %s326_s24, %s326_s24 }
   0xc   :  { %p333_p6 = por %p332_p5, %p331_p4 }
   0xe   :  { %p334_p7 = pnand %p333_p6, %p327_p3 }
  0x10   :  { %337 = shalt.err (!%p334_p7)
}
  0x11   :  { %25 = dma.hbm_to_vmem [thread:$0]  %s523_s1, 256, %s23_s16, [#allocation4]  }
  0x12   :  { %404 = dma.done.wait [#allocation4], 256  }
  0x13   :  { %405 = vsyncadd [#allocation4], 4294967040  ;;  %v29_v0 = vld [vmem:[#allocation3] sm:$0xff]  ;;  %v30_v1 = vld [vmem:[#allocation3 + $0x8] sm:$0xff]  ;;  %v455_v2 = vstv %s522_s0  ;;  %v77_v27 = vlaneseq  ;;  %v411_v29 = vmov 1966171168  }
  0x14   :  { %v32_v3 = vand.u32 2147483647, %v29_v0  ;;  %v33_v4 = vand.u32 2147483647, %v30_v1  ;;  %vm52_vm0 = vcmp.lt.f32.partialorder %v29_v0, 0.0  ;;  %vm53_vm1 = vcmp.lt.f32.partialorder %v30_v1, 0.0 }
  0x15   :  { %v75_v30 = vunpack.c.l.s4 %v411_v29  ;;  %v97_v31 = vmul.f32 %v455_v2, %v29_v0  ;;  %v98_v34 = vmul.f32 %v455_v2, %v30_v1  ;;  %v78_v37 = vshrl.u32 %v77_v27, 7  ;;  %s412_s0 = smov [#allocation6]  }
  0x16   :  { %v35_v5 = vmul.f32 %v455_v2, %v32_v3  ;;  %v36_v6 = vmul.f32 %v455_v2, %v33_v4  ;;  %vm176_vm2 = vcmask 1043456   ;;  %s245_s1 = sshll.u32 %s412_s0, 4  ;;  %s246_s1 = int_to_ptr.vmem [resolvable:$true] %s245_s1 }
  0x17   :  { %v76_v39 = vunpack.c.0.s8 %v75_v30  ;;  %v99_v40 = vadd.f32 1e-08, %v97_v31  ;;  %v100_v43 = vadd.f32 1e-08, %v98_v34  ;;  %s338_s29 = scalar_lea.vmem %s246_s1, 64  ;;  %p343_p9 = scmp.lt.s32.totalorder %s246_s1, %s246_s1 }
  0x18   :  { %v37_v7 = vadd.f32 1e-08, %v35_v5  ;;  %v38_v8 = vadd.f32 1e-08, %v36_v6  ;;  %p339_p8 = scmp.ne.s32.totalorder %s246_s1, %s338_s29  ;;  %p344_p10 = scmp.lt.s32.totalorder %s338_s29, %s338_s29 }
  0x19   :  { %v462_v50 = vsub.s32 %v76_v39, %v78_v37 }
  0x1a   :  { %304 = vlog2.f32 %v37_v7  ;;  %p345_p11 = por %p344_p10, %p343_p9 }
  0x1b   :  { %306 = vlog2.f32 %v38_v8 }
  0x1c   :  { %p346_p12 = pnand %p345_p11, %p339_p8 }
  0x24   :  { %v305_v9 = vpop.eup %304 }
  0x25   :  { %v307_v10 = vpop.eup %306  ;;  %v40_v11 = vmul.f32 0.6931472, %v305_v9 }
  0x26   :  { %v42_v12 = vmul.f32 0.6931472, %v307_v10 }
  0x27   :  { %v44_v13 = vmul.f32 1.442695, %v40_v11 }
  0x28   :  { %v45_v14 = vmul.f32 1.442695, %v42_v12 }
  0x29   :  { %v46_v15 = vsub.f32 0.0, %v44_v13 }
  0x2a   :  { %v47_v16 = vsub.f32 0.0, %v45_v14 }
  0x2b   :  { %v287_v17 = vround.rtne.f32 %v46_v15 }
  0x2c   :  { %v288_v18 = vround.rtne.f32 %v47_v16 }
  0x2d   :  { %v50_v19 = vmax.f32 %v287_v17, 0.0 }
  0x2e   :  { %v51_v20 = vmax.f32 %v288_v18, 0.0 }
  0x2f   :  { %v101_v21 = vsub.f32 0.0, %v50_v19  ;;  %v54_v22 = vadd.f32 1.0, %v50_v19 }
  0x30   :  { %v102_v23 = vsub.f32 0.0, %v51_v20  ;;  %v55_v24 = vadd.f32 1.0, %v51_v20 }
  0x31   :  { %308 = vpow2.f32 %v101_v21  ;;  %v56_v25 = vsub.f32 0.0, %v54_v22 }
  0x32   :  { %310 = vpow2.f32 %v102_v23  ;;  %v57_v26 = vsub.f32 0.0, %v55_v24 }
  0x33   :  { %v58_v28 = vsel %vm52_vm0, %v56_v25, %v54_v22 }
  0x34   :  { %v59_v32 = vsel %vm53_vm1, %v57_v26, %v55_v24  ;;  %v289_v33 = vtrunc.f32 %v58_v28 }
  0x35   :  { %v291_v35 = vtrunc.f32 %v59_v32 }
  0x36   :  { %v290_v36 = vcvt.f32.s32 %v289_v33 }
  0x37   :  { %v292_v38 = vcvt.f32.s32 %v291_v35 }
  0x38   :  { %v62_v41 = vcombine.high %v290_v36, %v290_v36  ;;  %v64_v42 = vpack.c.b16 %v290_v36, %v290_v36 }
  0x39   :  { %v63_v44 = vcombine.high %v292_v38, %v292_v38  ;;  %v68_v45 = vpack.c.b16 %v292_v38, %v292_v38 }
  0x3a   :  { %v66_v46 = vpack.c.b16 %v62_v41, %v62_v41 }
  0x3b   :  { %v309_v47 = vpop.eup %308  ;;  %v70_v48 = vpack.c.b16 %v63_v44, %v63_v44 }
  0x3c   :  { %v311_v49 = vpop.eup %310  ;;  %v464_v51 = vsub.f32 %v99_v40, %v309_v47  ;;  %v281_v52 = vpack.c.b8 %v66_v46, %v64_v42 }
  0x3d   :  { %v466_v53 = vsub.f32 %v100_v43, %v311_v49  ;;  %v282_v54 = vpack.c.b8 %v70_v48, %v68_v45 }
  0x3e   :  { %v107_v55 = vand.u32 2147483647, %v464_v51  ;;  %v80_v56 = vrot.slane %v281_v52, %v462_v50 }
  0x3f   :  { %v108_v57 = vand.u32 2147483647, %v466_v53  ;;  %v87_v58 = vrot.slane %v282_v54, %v462_v50 }
  0x40   :  { %v109_v59 = vmul.f32 %v107_v55, %v455_v2  ;;  %v172_v60 = vcombine.high %v107_v55, %v107_v55  ;;  %v177_v61 = vsel %vm176_vm2, %v107_v55, -inf }
  0x41   :  { %v110_v62 = vmul.f32 %v108_v57, %v455_v2  ;;  %v88_v63 = vcombine.low %v80_v56, %v87_v58  ;;  %v173_v0 = vcombine.high %v108_v57, %v108_v57  ;;  %v178_v1 = vrot.slane %v177_v61, 4 }
  0x42   :  { %v111_v3 = vadd.f32 1e-08, %v109_v59  ;;  %v184_v4 = vsel %vm176_vm2, %v172_v60, -inf  ;;  %v191_v5 = vsel %vm176_vm2, %v108_v57, -inf }
  0x43   :  { %v112_v6 = vadd.f32 1e-08, %v110_v62  ;;  %283 = vst.sshfl [vmem:[#allocation6] sm:$0x55 pattern:$0x73625140] %v88_v63  ;;  %v179_v7 = vmax.f32 %v177_v61, %v178_v1 }
  0x44   :  { %v185_v8 = vrot.slane %v184_v4, 4  ;;  %v192_v9 = vrot.slane %v191_v5, 4  ;;  %312 = vlog2.f32 %v111_v3  ;;  %v198_v10 = vsel %vm176_vm2, %v173_v0, -inf }
  0x45   :  { %349 = shalt.err (!%p346_p12)
}
  0x46   :  { %s350_s6 = scalar_lea.hbm %s524_s2, 64 }
  0x47   :  { %p351_p13 = scmp.ne.s32.totalorder %s524_s2, %s350_s6  ;;  %p354_p0 = scmp.lt.u32.totalorder %s350_s6, %s524_s2 }
  0x49   :  { %p356_p1 = pnand %p354_p0, %p351_p13 }
  0x4b   :  { %359 = shalt.err (!%p356_p1)
}
  0x4c   :  { %248 = dma.vmem_to_hbm [thread:$0]  %s246_s1, 64, %s524_s2, [#allocation5]   ;;  %314 = vlog2.f32 %v112_v6  ;;  %v180_v2 = vrot.slane %v179_v7, 2  ;;  %v186_v11 = vmax.f32 %v184_v4, %v185_v8  ;;  %v193_v12 = vmax.f32 %v191_v5, %v192_v9 }
  0x4d   :  { %v199_v13 = vrot.slane %v198_v10, 4  ;;  %vm236_vm3 = vcmp.lt.s32.totalorder %v77_v27, 512  ;;  %vm125_vm4 = vcmp.lt.f32.partialorder %v464_v51, 0.0  ;;  %vm126_vm5 = vcmp.lt.f32.partialorder %v466_v53, 0.0  ;;  %s413_s2 = smov [#allocation7]   ;;  %s414_s14 = smov [#allocation9]  }
  0x4e   :  { %v181_v14 = vmax.f32 %v179_v7, %v180_v2  ;;  %v187_v15 = vrot.slane %v186_v11, 2  ;;  %v194_v16 = vrot.slane %v193_v12, 2  ;;  %v313_v28 = vpop.eup %312  ;;  %s255_s13 = sshll.u32 %s413_s2, 4  ;;  %s265_s15 = sshll.u32 %s414_s14, 4  ;;  %s256_s13 = int_to_ptr.vmem [resolvable:$true] %s255_s13  ;;  %s266_s15 = int_to_ptr.vmem [resolvable:$true] %s265_s15 }
  0x4f   :  { %v200_v17 = vmax.f32 %v198_v10, %v199_v13  ;;  %v114_v32 = vmul.f32 0.6931472, %v313_v28  ;;  %s360_s16 = scalar_lea.vmem %s256_s13, 64  ;;  %p365_p3 = scmp.lt.s32.totalorder %s256_s13, %s256_s13 }
  0x50   :  { %v182_v18 = vrot.slane %v181_v14, 1  ;;  %v188_v19 = vmax.f32 %v186_v11, %v187_v15  ;;  %v195_v20 = vmax.f32 %v193_v12, %v194_v16  ;;  %p361_p2 = scmp.ne.s32.totalorder %s256_s13, %s360_s16  ;;  %p366_p4 = scmp.lt.s32.totalorder %s360_s16, %s360_s16 }
  0x51   :  { %v201_v21 = vrot.slane %v200_v17, 2  ;;  %v117_v36 = vmul.f32 1.442695, %v114_v32 }
  0x52   :  { %v183_v22 = vmax.f32 %v181_v14, %v182_v18  ;;  %v189_v23 = vrot.slane %v188_v19, 1  ;;  %v196_v24 = vrot.slane %v195_v20, 1  ;;  %p367_p5 = por %p366_p4, %p365_p3 }
  0x53   :  { %v202_v25 = vmax.f32 %v200_v17, %v201_v21  ;;  %v119_v40 = vsub.f32 0.0, %v117_v36 }
  0x54   :  { %v190_v26 = vmax.f32 %v188_v19, %v189_v23  ;;  %v197_v29 = vmax.f32 %v195_v20, %v196_v24  ;;  %p368_p6 = pnand %p367_p5, %p361_p2 }
  0x55   :  { %v203_v30 = vrot.slane %v202_v25, 1  ;;  %v293_v43 = vround.rtne.f32 %v119_v40 }
  0x56   :  { %v315_v31 = vpop.eup %314  ;;  %v209_v33 = vcombine.low %v183_v22, %v190_v26 }
  0x57   :  { %v116_v34 = vmul.f32 0.6931472, %v315_v31  ;;  %v204_v35 = vmax.f32 %v202_v25, %v203_v30  ;;  %v123_v46 = vmax.f32 %v293_v43, 0.0 }
  0x58   :  { %v217_v39 = vrot.slane %v209_v33, %v462_v50 }
  0x59   :  { %v118_v37 = vmul.f32 1.442695, %v116_v34  ;;  %v210_v38 = vcombine.low %v197_v29, %v204_v35  ;;  %v127_v49 = vadd.f32 1.0, %v123_v46 }
  0x5b   :  { %v120_v41 = vsub.f32 0.0, %v118_v37  ;;  %v224_v42 = vrot.slane %v210_v38, %v462_v50  ;;  %v129_v54 = vsub.f32 0.0, %v127_v49 }
  0x5d   :  { %v294_v44 = vround.rtne.f32 %v120_v41  ;;  %v225_v45 = vcombine.low %v217_v39, %v224_v42  ;;  %v131_v56 = vsel %vm125_vm4, %v129_v54, %v127_v49 }
  0x5e   :  { %v295_v58 = vtrunc.f32 %v131_v56 }
  0x5f   :  { %v124_v47 = vmax.f32 %v294_v44, 0.0  ;;  %v232_v48 = vrot.slane %v225_v45, %v462_v50 }
  0x60   :  { %v296_v60 = vcvt.f32.s32 %v295_v58 }
  0x61   :  { %v128_v52 = vadd.f32 1.0, %v124_v47  ;;  %238 = vst.msk [vmem:[#allocation9] sm:$0xf] %vm236_vm3, %v232_v48 }
  0x62   :  { %v135_v62 = vcombine.high %v296_v60, %v296_v60  ;;  %v137_v27 = vpack.c.b16 %v296_v60, %v296_v60 }
  0x63   :  { %v130_v55 = vsub.f32 0.0, %v128_v52 }
  0x64   :  { %v139_v1 = vpack.c.b16 %v135_v62, %v135_v62 }
  0x65   :  { %v132_v57 = vsel %vm126_vm5, %v130_v55, %v128_v52 }
  0x66   :  { %v297_v59 = vtrunc.f32 %v132_v57  ;;  %v284_v4 = vpack.c.b8 %v139_v1, %v137_v27 }
  0x68   :  { %v298_v61 = vcvt.f32.s32 %v297_v59  ;;  %v153_v5 = vrot.slane %v284_v4, %v462_v50 }
  0x6a   :  { %v136_v63 = vcombine.high %v298_v61, %v298_v61  ;;  %v141_v0 = vpack.c.b16 %v298_v61, %v298_v61 }
  0x6c   :  { %v143_v3 = vpack.c.b16 %v136_v63, %v136_v63 }
  0x6e   :  { %v285_v51 = vpack.c.b8 %v143_v3, %v141_v0 }
  0x70   :  { %v160_v53 = vrot.slane %v285_v51, %v462_v50 }
  0x72   :  { %v161_v6 = vcombine.low %v153_v5, %v160_v53 }
  0x74   :  { %286 = vst.sshfl [vmem:[#allocation7] sm:$0x55 pattern:$0x73625140] %v161_v6 }
  0x75   :  { %371 = shalt.err (!%p368_p6)
}
  0x76   :  { %s372_s19 = scalar_lea.hbm %s525_s3, 64 }
  0x77   :  { %p373_p7 = scmp.ne.s32.totalorder %s525_s3, %s372_s19  ;;  %p376_p8 = scmp.lt.u32.totalorder %s372_s19, %s525_s3 }
  0x79   :  { %p378_p9 = pnand %p376_p8, %p373_p7 }
  0x7b   :  { %381 = shalt.err (!%p378_p9)
}
  0x7c   :  { %258 = dma.vmem_to_hbm [thread:$0]  %s256_s13, 64, %s525_s3, [#allocation8]  }
  0x7d   :  { %s382_s26 = scalar_lea.vmem %s266_s15, 64  ;;  %p387_p11 = scmp.lt.s32.totalorder %s266_s15, %s266_s15 }
  0x7e   :  { %p383_p10 = scmp.ne.s32.totalorder %s266_s15, %s382_s26  ;;  %p388_p12 = scmp.lt.s32.totalorder %s382_s26, %s382_s26 }
  0x80   :  { %p389_p13 = por %p388_p12, %p387_p11 }
  0x82   :  { %p390_p0 = pnand %p389_p13, %p383_p10 }
  0x84   :  { %393 = shalt.err (!%p390_p0)
}
  0x85   :  { %s394_s0 = scalar_lea.hbm %s526_s4, 64 }
  0x86   :  { %p395_p1 = scmp.ne.s32.totalorder %s526_s4, %s394_s0  ;;  %p398_p2 = scmp.lt.u32.totalorder %s394_s0, %s526_s4 }
  0x88   :  { %p400_p3 = pnand %p398_p2, %p395_p1 }
  0x8a   :  { %403 = shalt.err (!%p400_p3)
}
  0x8b   :  { %268 = dma.vmem_to_hbm [thread:$0]  %s266_s15, 64, %s526_s4, [#allocation8]  }
  0x8c   :  { %406 = dma.done.wait [#allocation5], 64  }
  0x8d   :  { %407 = vsyncadd [#allocation5], 4294967232 }
  0x8e   :  { %408 = dma.done.wait [#allocation8], 128  }
  0x8f   :  { %409 = vsyncadd [#allocation8], 4294967168 }
  0x90   :  { %278 = vsyncpa [#allocation4], 1 }
  0x91   :  { %279 = vsyncpa [#allocation5], 1 }
  0x92   :  { %280 = vsyncpa [#allocation8], 1 }

</bundles_post_ra>
